<compile_context>
chip_gen: v7x
topology: tpu7x:2x2x1
jax: 0.10.0
libtpu: 0.0.40
codegen_flags: <defaults>
</compile_context>

<pallas_src>
import math

import jax
import jax.numpy as jnp
import numpy as np
from jax import lax
from jax.experimental import pallas as pl
from jax.experimental.pallas import tpu as pltpu


# ----------------------------- Pallas kernel ------------------------------ #

def _pconv_kernel(xm_ref, ratio_ref, w_ref, b_ref, out_ref):
    # conv-as-matmul on the MXU (f32 operands, f32 accumulate).
    conv = jnp.dot(xm_ref[...], w_ref[...], preferred_element_type=jnp.float32)
    # Partial-conv renormalization (per-row scalar), then bias
    # (bias row is zeros when the module has no bias -> exact no-op).
    out_ref[...] = (conv * ratio_ref[...] + b_ref[...]).astype(out_ref.dtype)


# ------------------------------ JAX wrapper -------------------------------- #

def _to2(v):
    return (v, v) if not isinstance(v, tuple) else v


def _round_up(v, m):
    return ((v + m - 1) // m) * m


def _out_size(size, k, s, p, d):
    return (size + 2 * p - d * (k - 1) - 1) // s + 1


def _im2col(x, kh, kw, stride, padding, dilation):
    """NCHW -> [B*OH*OW, C*kh*kw] patches (K flattened in (C, kh, kw) order)."""
    B, C, H, W = x.shape
    sh, sw = stride
    ph, pw = padding
    dh, dw = dilation
    xpad = jnp.pad(x, ((0, 0), (0, 0), (ph, ph), (pw, pw)))
    OH = _out_size(H, kh, sh, ph, dh)
    OW = _out_size(W, kw, sw, pw, dw)
    pats = []
    for i in range(kh):
        for j in range(kw):
            di, dj = i * dh, j * dw
            pats.append(xpad[:, :, di:di + sh * OH:sh, dj:dj + sw * OW:sw])
    p = jnp.stack(pats, axis=2)                     # [B, C, kh*kw, OH, OW]
    p = p.reshape(B, C * kh * kw, OH, OW)           # K flattened as (C, kh, kw)
    p = p.transpose(0, 2, 3, 1).reshape(B * OH * OW, C * kh * kw)
    return p, OH, OW


def _mask_window_sum(mask, kh, kw, stride, padding, dilation):
    """Ones-conv over the mask: sum over the (Cin, kh, kw) window -> [B, OH, OW]."""
    B, C, H, W = mask.shape
    sh, sw = stride
    ph, pw = padding
    dh, dw = dilation
    m = jnp.sum(mask, axis=1)                       # [B, H, W]
    mpad = jnp.pad(m, ((0, 0), (ph, ph), (pw, pw)))
    OH = _out_size(H, kh, sh, ph, dh)
    OW = _out_size(W, kw, sw, pw, dw)
    s = jnp.zeros((B, OH, OW), jnp.float32)
    for i in range(kh):
        for j in range(kw):
            di, dj = i * dh, j * dw
            s = s + mpad[:, di:di + sh * OH:sh, dj:dj + sw * OW:sw]
    return s, OH, OW


_VMEM_WORKSET_BUDGET = 32 * 1024 * 1024   # fits every generation's default scoped VMEM


def _vmem_estimate(tile_n, K, tile_cout):
    # double-buffered f32 inputs (patches + ratio), weight + bias, output.
    return 4 * (2 * tile_n * (K + 1)
                + 2 * (K + 1) * tile_cout
                + 2 * tile_n * tile_cout)


def pconv2d_forward(x, mask, weight, bias=None, *, stride=1, padding=0,
                    dilation=1, tile_n=512):
    """Partial 2D convolution. x, mask: [B, Cin, H, W] float32 (NCHW).

    weight: [Cout, Cin, KH, KW] float32. bias: [Cout] or None.
    Returns (output, update_mask), both [B, Cout, OH, OW] float32.
    """
    stride, padding, dilation = _to2(stride), _to2(padding), _to2(dilation)
    B, Cin, H, W = x.shape
    Cout, _, KH, KW = weight.shape
    K = Cin * KH * KW

    # ---- mask bookkeeping in the wrapper (exact; tiny vs. the conv) --------
    msum, OH, OW = _mask_window_sum(mask, KH, KW, stride, padding, dilation)
    update_mask_1 = jnp.clip(msum, 0.0, 1.0)                        # [B, OH, OW]
    mask_ratio_1 = (float(KH * KW) / (msum + 1e-8)) * update_mask_1

    # ---- im2col of (x * mask): the only large tensor the kernel streams ----
    xp, _, _ = _im2col(x * mask, KH, KW, stride, padding, dilation)  # [N, K]
    N = B * OH * OW
    ratio = mask_ratio_1.reshape(N, 1).astype(jnp.float32)

    # ---- lane-dense Cout padding and tile selection -------------------------
    Coutp = _round_up(Cout, 128)
    if K * Coutp * 4 > 8 * 1024 * 1024:       # large weight: tile Cout as well
        tile_cout = 256
        Coutp = _round_up(Cout, tile_cout)
    else:
        tile_cout = Coutp

    tile_n = min(int(tile_n), _round_up(max(N, 1), 128))
    while tile_n > 128 and _vmem_estimate(tile_n, K, tile_cout) > _VMEM_WORKSET_BUDGET:
        tile_n = max(128, _round_up(tile_n // 2, 8))
    if N > 128 and pl.cdiv(N, tile_n) < 2:    # keep >= 2 row tiles for megacore
        tile_n = max(128, _round_up(pl.cdiv(N, 2), 8))

    Np = _round_up(N, tile_n)
    if Np != N:
        # zero-padded rows get ratio 0 -> harmless; sliced off below.
        xp = jnp.pad(xp, ((0, Np - N), (0, 0)))
        ratio = jnp.pad(ratio, ((0, Np - N), (0, 0)))

    w2d = weight.reshape(Cout, K).T.astype(jnp.float32)             # [K, Cout]
    if Coutp != Cout:
        w2d = jnp.pad(w2d, ((0, 0), (0, Coutp - Cout)))
    b_row = jnp.zeros((1, Coutp), jnp.float32)
    if bias is not None:
        b_row = b_row.at[0, :Cout].set(bias.reshape(Cout).astype(jnp.float32))

    grid = (Np // tile_n, Coutp // tile_cout)
    vmem_limit = int(min(64 * 1024 * 1024,
                         max(32 * 1024 * 1024,
                             2 * _vmem_estimate(tile_n, K, tile_cout))))

    out_flat = pl.pallas_call(
        _pconv_kernel,
        out_shape=jax.ShapeDtypeStruct((Np, Coutp), jnp.float32),
        grid_spec=pltpu.PrefetchScalarGridSpec(
            num_scalar_prefetch=0,
            grid=grid,
            in_specs=[
                pl.BlockSpec((tile_n, K), lambda i, j: (i, 0)),       # x*mask patches
                pl.BlockSpec((tile_n, 1), lambda i, j: (i, 0)),       # per-row ratio
                pl.BlockSpec((K, tile_cout), lambda i, j: (0, j)),    # weight tile
                pl.BlockSpec((1, tile_cout), lambda i, j: (0, j)),    # bias tile
            ],
            out_specs=pl.BlockSpec((tile_n, tile_cout), lambda i, j: (i, j)),
        ),
        compiler_params=pltpu.CompilerParams(
            dimension_semantics=("parallel", "parallel"),
            vmem_limit_bytes=vmem_limit),
    )(xp, ratio, w2d, b_row)

    out_flat = out_flat[:N, :Cout]
    out = out_flat.reshape(B, OH, OW, Cout).transpose(0, 3, 1, 2)
    # update_mask is identical across output channels (all-ones mask kernel).
    update_mask = jnp.broadcast_to(update_mask_1[:, None, :, :],
                                   (B, Cout, OH, OW)).astype(jnp.float32)
    # TODO(synk): legacy_behaviour's "+bias; -bias" numerical-noise replication
    # is intentionally not reproduced (it is a no-op up to float rounding).
    return out, update_mask


# ------------------------- pure-JAX reference ------------------------------ #

def _reference(x, mask, weight, bias, stride, padding, dilation):
    stride, padding, dilation = _to2(stride), _to2(padding), _to2(dilation)
    dn = ("NCHW", "OIHW", "NCHW")
    pads = [(padding[0], padding[0]), (padding[1], padding[1])]
    output = lax.conv_general_dilated(x * mask, weight, stride, pads,
                                      rhs_dilation=dilation,
                                      dimension_numbers=dn)
    ones_w = jnp.ones_like(weight)
    update_mask = lax.conv_general_dilated(mask, ones_w, stride, pads,
                                           rhs_dilation=dilation,
                                           dimension_numbers=dn)
    kh, kw = weight.shape[2], weight.shape[3]
    mask_ratio = (kh * kw) / (update_mask + 1e-8)
    update_mask = jnp.clip(update_mask, 0.0, 1.0)
    mask_ratio = mask_ratio * update_mask
    output = output * mask_ratio
    if bias is not None:
        output = output + bias.reshape(1, -1, 1, 1)
    return output, update_mask


# --------------------------------- main ------------------------------------ #

if __name__ == "__main__":
    key = jax.random.PRNGKey(0)
    B, Cin, Cout, H, W = 2, 4, 8, 16, 16
    KH = KW = 3
    stride, padding, dilation = 1, 1, 1
    use_bias = True

    k1, k2, k3, k4 = jax.random.split(key, 4)
    x = jax.random.normal(k1, (B, Cin, H, W), jnp.float32)
    mask = (jax.random.uniform(k2, (B, Cin, H, W)) > 0.3).astype(jnp.float32)

    # Deterministic parameter init mirroring nn.Conv2d's kaiming_uniform(a=sqrt(5)):
    fan_in = Cin * KH * KW
    bound = 1.0 / math.sqrt(fan_in)
    weight = jax.random.uniform(k3, (Cout, Cin, KH, KW), jnp.float32,
                                minval=-bound, maxval=bound)
    bias = (jax.random.uniform(k4, (Cout,), jnp.float32,
                               minval=-bound, maxval=bound)
            if use_bias else None)

    out, upd_mask = pconv2d_forward(x, mask, weight, bias,
                                    stride=stride, padding=padding,
                                    dilation=dilation)
    jax.block_until_ready((out, upd_mask))

    ref_out, ref_upd = _reference(x, mask, weight, bias, stride, padding,
                                  dilation)
    np.testing.assert_allclose(np.asarray(out), np.asarray(ref_out),
                               rtol=1e-4, atol=1e-4)
    np.testing.assert_allclose(np.asarray(upd_mask), np.asarray(ref_upd),
                               rtol=1e-5, atol=1e-5)

    print("KERNEL_OK")
</pallas_src>

<mosaic_0001>
module attributes {stable_mosaic.version = 11 : i64} {
  func.func @_pconv_kernel(%arg0: i32, %arg1: i32, %arg2: memref<256x36xf32, #tpu.memory_space<vmem>>, %arg3: memref<256x1xf32, #tpu.memory_space<vmem>>, %arg4: memref<36x128xf32, #tpu.memory_space<vmem>>, %arg5: memref<1x128xf32, #tpu.memory_space<vmem>>, %arg6: memref<256x128xf32, #tpu.memory_space<vmem>>) attributes {dimension_semantics = [#tpu.dimension_semantics<parallel>, #tpu.dimension_semantics<parallel>], iteration_bounds = array<i64: 2, 1>, scalar_prefetch = 0 : i64, scratch_operands = 0 : i64, tpu.core_type = #tpu.core_type<tc>, window_params = [{transform_indices = @transform_0, window_bounds = array<i64: 256, 36>}, {transform_indices = @transform_1, window_bounds = array<i64: 256, 1>}, {transform_indices = @transform_2, window_bounds = array<i64: 36, 128>}, {transform_indices = @transform_3, window_bounds = array<i64: 1, 128>}, {transform_indices = @transform_4, window_bounds = array<i64: 256, 128>}]} {
    %c0 = arith.constant 0 : index
    %c0_0 = arith.constant 0 : index
    %0 = vector.load %arg2[%c0, %c0_0] : memref<256x36xf32, #tpu.memory_space<vmem>>, vector<256x36xf32>
    %c0_1 = arith.constant 0 : index
    %c0_2 = arith.constant 0 : index
    %1 = vector.load %arg4[%c0_1, %c0_2] : memref<36x128xf32, #tpu.memory_space<vmem>>, vector<36x128xf32>
    %cst = arith.constant dense<0.000000e+00> : vector<256x128xf32>
    %2 = tpu.matmul %0, %1, %cst {dimension_numbers = #tpu.dot_dimension_numbers<[1], [0], [0], [1], [0, 0, 1, 1], [], []>} : vector<256x36xf32>, vector<36x128xf32>, vector<256x128xf32> -> vector<256x128xf32>
    %c0_3 = arith.constant 0 : index
    %c0_4 = arith.constant 0 : index
    %3 = vector.load %arg3[%c0_3, %c0_4] : memref<256x1xf32, #tpu.memory_space<vmem>>, vector<256x1xf32>
    %4 = vector.broadcast %3 : vector<256x1xf32> to vector<256x128xf32>
    %5 = arith.mulf %2, %4 : vector<256x128xf32>
    %c0_5 = arith.constant 0 : index
    %c0_6 = arith.constant 0 : index
    %6 = vector.load %arg5[%c0_5, %c0_6] : memref<1x128xf32, #tpu.memory_space<vmem>>, vector<1x128xf32>
    %7 = vector.broadcast %6 : vector<1x128xf32> to vector<256x128xf32>
    %8 = arith.addf %5, %7 : vector<256x128xf32>
    %c0_7 = arith.constant 0 : index
    %c0_8 = arith.constant 0 : index
    %9 = vector.load %arg6[%c0_7, %c0_8] : memref<256x128xf32, #tpu.memory_space<vmem>>, vector<256x128xf32>
    tpu.vector_store %arg6[%c0_7, %c0_8], %8 {strides = array<i32>} : memref<256x128xf32, #tpu.memory_space<vmem>>, vector<256x128xf32>,
    return
  }
  func.func @transform_0(%arg0: i32, %arg1: i32) -> (i32, i32) {
    %c0_i32 = arith.constant 0 : i32
    %c0_i32_0 = arith.constant 0 : i32
    return %arg0, %c0_i32 : i32, i32
  }
  func.func @transform_1(%arg0: i32, %arg1: i32) -> (i32, i32) {
    %c0_i32 = arith.constant 0 : i32
    %c0_i32_0 = arith.constant 0 : i32
    return %arg0, %c0_i32 : i32, i32
  }
  func.func @transform_2(%arg0: i32, %arg1: i32) -> (i32, i32) {
    %c0_i32 = arith.constant 0 : i32
    %c0_i32_0 = arith.constant 0 : i32
    return %c0_i32, %arg1 : i32, i32
  }
  func.func @transform_3(%arg0: i32, %arg1: i32) -> (i32, i32) {
    %c0_i32 = arith.constant 0 : i32
    %c0_i32_0 = arith.constant 0 : i32
    return %c0_i32, %arg1 : i32, i32
  }
  func.func @transform_4(%arg0: i32, %arg1: i32) -> (i32, i32) {
    %c0_i32 = arith.constant 0 : i32
    return %arg0, %arg1 : i32, i32
  }
}

</mosaic_0001>

<bundles_post_ra>
// kernel: tpu_custom_call.1
= control target key start
LH: loop header
LB: loop body
LE: loop exit
PB: predicated region body
PF: predicated region fallthrough
CT: control target
= control target key end

     0   :  { %9 = vsyncpa [#allocation3], 0  ;;  %s1731_s0 = inlined_call_operand.vmem [shape: f32[512,36], index: 0, kind: input, shape index: {}]   ;;  %s1732_s1 = inlined_call_operand.vmem [shape: f32[512,1], index: 1, kind: input, shape index: {}]   ;;  %s1733_s2 = inlined_call_operand.vmem [shape: f32[36,128], index: 2, kind: input, shape index: {}]   ;;  %s1734_s3 = inlined_call_operand.vmem [shape: f32[1,128], index: 3, kind: input, shape index: {}]   ;;  %s1735_s4 = inlined_call_operand.hbm [shape: f32[512,128], index: 4, kind: output, shape index: {}]  }
   0x1   :  { %11 = vsyncpa [#allocation3 + $0x1], 0  ;;  %s1380_s15 = smov 0   ;;  %s1382_s16 = smov 0  }
   0x2   :  { %s1384_s17 = smov 0   ;;  %s1386_s18 = smov 0  }
   0x3   :  { %s1388_s19 = smov 0   ;;  %s1390_s20 = smov 0  }
   0x4 LB: > { %s1050_s21 = sadd.s32 4294967295, %s1349_s20   ;;  %s1051_s22 = sadd.s32 4294967294, %s1349_s20   ;;  %s1349_s20 = sphi %s1390_s20, %s17_s20   ;;  %s1345_s19 = sphi %s1388_s19, %s1742_s19   ;;  %s1341_s18 = sphi %s1386_s18, %s1741_s18   ;;  %s1337_s17 = sphi %s1384_s17, %s1740_s17   ;;  %s1333_s16 = sphi %s1382_s16, %s1739_s16   ;;  %s1329_s15 = sphi %s1380_s15, %s1738_s15  }
   0x5   : > { %s29_s23 = sadd.s32 1, %s1345_s19  ;;  %s142_s24 = sadd.s32 1, %s1337_s17 }
   0x6   : > { %p31_p0 = scmp.ge.s32.totalorder %s29_s23, 2  ;;  %p152_p1 = scmp.ne.s32.totalorder %s1337_s17, %s1333_s16 }
   0x7   : > { %p153_p2 = scmp.eq.s32.totalorder %s1050_s21, 1  ;;  %p158_p3 = scmp.ne.s32.totalorder %s1333_s16, %s1329_s15 }
   0x8   : > { %s1744_s23 = smov (%p31_p0, %s29_s23), 0  ;;  %p159_p5 = scmp.eq.s32.totalorder %s1051_s22, 1 }
   0x9   : > { %p1420_p4 = por %p153_p2, %p152_p1  ;;  %s137_s26 = ssub.s32 %s1345_s19, %s1744_s23 }
   0xa   : > { %p1056_p6 = scmp.ge.s32.totalorder %s1349_s20, 1  ;;  %p140_p7 = scmp.eq.s32.totalorder %s137_s26, 0 }
   0xb   : > { %p1427_p8 = por %p159_p5, %p158_p3  ;;  %p208_p9 = scmp.lt.s32.totalorder %s1349_s20, 3 }
   0xc   : > { %s1433_s28 = scalar_select %p140_p7, %s1337_s17, %s142_s24  }
   0xd   : > { %p209_p10 = pnand %p1056_p6, %p208_p9 }
   0xe   : > { %v298_v0 = vld [vmem:[%s1733_s2] sm:$0xff] (!%p209_p10)  ;;  %v299_v1 = vld [vmem:[%s1733_s2 + $0x8] sm:$0xff] (!%p209_p10)  ;;  %v300_v2 = vld [vmem:[%s1733_s2 + $0x10] sm:$0xff] (!%p209_p10)  ;;  %s1058_s9 = sshll.u32 (!%p209_p10), %s1341_s18, 5  ;;  %v1351_v4 = vmov (!%p209_p10), 0   ;;  %vm400_vm0 = vcmask (!%p209_p10), 1043456  }
   0xf   : > { %212 = sbr.rel (%p209_p10) target bundleno = 289 (0x121), region = 36  ;;  %v1197_v3 = vpack.c.bf16 (!%p209_p10), %v299_v1, %v298_v0  ;;  %1270 = vset.pattern.permute.xlu1 (!%p209_p10), %v1351_v4  ;;  %1269 = vset.pattern.permute.xlu0 (!%p209_p10), %v1351_v4  ;;  %v301_v5 = vld [vmem:[%s1733_s2 + $0x18] sm:$0xff] (!%p209_p10)  ;;  %p247_p11 = scmp.lt.s32.totalorder (!%p209_p10), %s1058_s9, 63  ;;  %v302_v9 = vld [vmem:[%s1733_s2 + $0x20] sm:$0xf] (!%p209_p10)  ;;  %vm303_vm1 = vcmask (!%p209_p10), 293888  }
  0x10   : > { %v1201_v6 = vpack.c.bf16 (!%p209_p10), %v301_v5, %v300_v2  ;;  %s243_s5 = sand.u32 (!%p209_p10), 1, %s1333_s16   ;;  %s1101_s10 = sshll.u32 (!%p209_p10), %s1341_s18, 12 }
  0x11   : > { %1198 = vmatprep.subr.bf16.mxu0 (!%p209_p10), %v1197_v3  ;;  %1205 = vmatprep.subr.bf16.mxu1 (!%p209_p10), %v1197_v3  ;;  %s1057_s6 = sshll.u32 (!%p209_p10), %s243_s5, 8  ;;  %s1673_s13 = scalar_lea.hbm (!%p209_p10), %s1735_s4, %s1101_s10 }
  0x12   : > { %1200 = vmatpush3.bf16.msra.mxu0 (!%p209_p10), %v1197_v3  ;;  %1208 = vmatpush3.bf16.msra.mxu1 (!%p209_p10), %v1197_v3  ;;  %s1685_s14 = scalar_lea.sflag (!%p209_p10), [#allocation3], %s243_s5  ;;  %s1352_s22 = smov (!%p209_p10), [#allocation2]  }
  0x13   : > { %1202 = vmatprep.subr.bf16.mxu0 (!%p209_p10), %v1201_v6  ;;  %1206 = vmatprep.subr.bf16.mxu1 (!%p209_p10), %v1201_v6  ;;  %s1275_s24 = sshll.u32 (!%p209_p10), %s1352_s22, 4  ;;  %s1276_s24 = int_to_ptr.vmem [resolvable:$false] %s1275_s24 }
  0x16   : > { %s1746_s9 = smov (!%p247_p11, %s1058_s9), 63  ;;  %1204 = vmatpush3.bf16.msra.mxu0 %v1201_v6  ;;  %1209 = vmatpush3.bf16.msra.mxu1 %v1201_v6 }
  0x17   : > { %s1059_s12 = sshll.u32 %s1746_s9, 3  ;;  %1147 = vmatprep.subr.msk.mxu0 %vm400_vm0, %v302_v9  ;;  %1207 = vmatprep.subr.msk.mxu1 %vm400_vm0, %v302_v9  ;;  %s1599_s9 = scalar_lea.vmem [#allocation2], %s1057_s6 }
  0x18   : > { %s1451_s21 = scalar_lea.vmem %s1732_s1, %s1059_s12  ;;  %s1456_s26 = scalar_lea.vmem %s1731_s0, %s1059_s12 }
  0x19   : > { %v631_v7 = vld [vmem:[%s1451_s21 + $0x10] sm:$0xff]  ;;  %v629_v8 = vld [vmem:[%s1451_s21] sm:$0xff]  ;;  %v632_v12 = vld [vmem:[%s1451_s21 + $0x18] sm:$0xff]  ;;  %s939_s11 = sshll.u32 %s1599_s9, 4  ;;  %s1675_s11 = int_to_ptr.vmem [resolvable:$true] %s939_s11 }
  0x1a   : > { %v266_v10 = vld [vmem:[%s1456_s26] sm:$0xff]  ;;  %673 = vperm.xlu1 %1270, %v631_v7   ;;  %663 = vperm.xlu0 %1269, %v629_v8   ;;  %v630_v13 = vld [vmem:[%s1451_s21 + $0x8] sm:$0xff]  ;;  %v268_v16 = vld [vmem:[%s1456_s26 + $0x10] sm:$0xff]  ;;  %p1278_p1 = scmp.lt.s32.totalorder %s1675_s11, %s1276_s24 }
  0x1b   : > { %v282_v11 = vld [vmem:[%s1456_s26 + $0x80] sm:$0xff]  ;;  %1149 = vmatprep.mubr.msk.f32.mxu0 %vm303_vm1, %v266_v10  ;;  %v267_v14 = vld [vmem:[%s1456_s26 + $0x8] sm:$0xff]  ;;  %1148 = vmatpush3.msk.msra.mxu0 %vm400_vm0, %v302_v9  ;;  %v284_v17 = vld [vmem:[%s1456_s26 + $0x90] sm:$0xff] }
  0x1c   : > { %1173 = vmatprep.mubr.msk.f32.mxu1 %vm303_vm1, %v282_v11  ;;  %v283_v15 = vld [vmem:[%s1456_s26 + $0x88] sm:$0xff]  ;;  %1210 = vmatpush3.msk.msra.mxu1 %vm400_vm0, %v302_v9  ;;  %v633_v19 = vld [vmem:[%s1451_s21 + $0x20] sm:$0xff]  ;;  %v269_v20 = vld [vmem:[%s1456_s26 + $0x18] sm:$0xff] }
  0x1d   : > { %1150 = vmatmul.mubr.msk.f32.vlgmr.msra.gmra.mrb[0].mxu0 %vm303_vm1, %v267_v14  ;;  %1174 = vmatmul.mubr.msk.f32.vlgmr.msra.gmra.mrb[0].mxu1 %vm303_vm1, %v283_v15  ;;  %v634_v18 = vld [vmem:[%s1451_s21 + $0x28] sm:$0xff]  ;;  %v285_v21 = vld [vmem:[%s1456_s26 + $0x98] sm:$0xff]  ;;  %v270_v22 = vld [vmem:[%s1456_s26 + $0x20] sm:$0xff] }
  0x1e   : > { %678 = vperm.xlu1 %1270, %v632_v12   ;;  %668 = vperm.xlu0 %1269, %v630_v13   ;;  %v286_v23 = vld [vmem:[%s1456_s26 + $0xa0] sm:$0xff]  ;;  %v636_v24 = vld [vmem:[%s1451_s21 + $0x38] sm:$0xff]  ;;  %v635_v25 = vld [vmem:[%s1451_s21 + $0x30] sm:$0xff] }
  0x1f   : > { %1152 = vmatprep.mubr.msk.f32.mxu0 %vm303_vm1, %v268_v16  ;;  %1176 = vmatprep.mubr.msk.f32.mxu1 %vm303_vm1, %v284_v17  ;;  %v271_v26 = vld [vmem:[%s1456_s26 + $0x28] sm:$0xff]  ;;  %v272_v28 = vld [vmem:[%s1456_s26 + $0x30] sm:$0xff]  ;;  %v637_v31 = vld [vmem:[%s1451_s21 + $0x40] sm:$0xff] }
  0x20   : > { %v287_v27 = vld [vmem:[%s1456_s26 + $0xa8] sm:$0xff]  ;;  %v288_v29 = vld [vmem:[%s1456_s26 + $0xb0] sm:$0xff]  ;;  %v273_v32 = vld [vmem:[%s1456_s26 + $0x38] sm:$0xff] }
  0x21   : > { %1153 = vmatmul.mubr.msk.f32.gmra.mrb[2].mxu0 %vm303_vm1, %v269_v20  ;;  %1177 = vmatmul.mubr.msk.f32.gmra.mrb[2].mxu1 %vm303_vm1, %v285_v21  ;;  %v638_v30 = vld [vmem:[%s1451_s21 + $0x48] sm:$0xff]  ;;  %v289_v33 = vld [vmem:[%s1456_s26 + $0xb8] sm:$0xff]  ;;  %v274_v34 = vld [vmem:[%s1456_s26 + $0x40] sm:$0xff] }
  0x22   : > { %688 = vperm.xlu1 %1270, %v634_v18   ;;  %683 = vperm.xlu0 %1269, %v633_v19   ;;  %v290_v35 = vld [vmem:[%s1456_s26 + $0xc0] sm:$0xff]  ;;  %v640_v36 = vld [vmem:[%s1451_s21 + $0x58] sm:$0xff]  ;;  %v639_v37 = vld [vmem:[%s1451_s21 + $0x50] sm:$0xff] }
  0x23   : > { %1155 = vmatprep.mubr.msk.f32.mxu0 %vm303_vm1, %v270_v22  ;;  %1179 = vmatprep.mubr.msk.f32.mxu1 %vm303_vm1, %v286_v23  ;;  %v275_v38 = vld [vmem:[%s1456_s26 + $0x48] sm:$0xff]  ;;  %v276_v40 = vld [vmem:[%s1456_s26 + $0x50] sm:$0xff]  ;;  %v641_v43 = vld [vmem:[%s1451_s21 + $0x60] sm:$0xff] }
  0x24   : > { %v291_v39 = vld [vmem:[%s1456_s26 + $0xc8] sm:$0xff]  ;;  %v292_v41 = vld [vmem:[%s1456_s26 + $0xd0] sm:$0xff]  ;;  %v277_v44 = vld [vmem:[%s1456_s26 + $0x58] sm:$0xff] }
  0x25   : > { %1156 = vmatmul.mubr.msk.f32.gmra.mrb[4].mxu0 %vm303_vm1, %v271_v26  ;;  %1180 = vmatmul.mubr.msk.f32.gmra.mrb[4].mxu1 %vm303_vm1, %v287_v27  ;;  %v642_v42 = vld [vmem:[%s1451_s21 + $0x68] sm:$0xff]  ;;  %v293_v45 = vld [vmem:[%s1456_s26 + $0xd8] sm:$0xff]  ;;  %v278_v46 = vld [vmem:[%s1456_s26 + $0x60] sm:$0xff] }
  0x26   : > { %698 = vperm.xlu1 %1270, %v636_v24   ;;  %693 = vperm.xlu0 %1269, %v635_v25   ;;  %v294_v47 = vld [vmem:[%s1456_s26 + $0xe0] sm:$0xff]  ;;  %v644_v48 = vld [vmem:[%s1451_s21 + $0x78] sm:$0xff]  ;;  %v643_v49 = vld [vmem:[%s1451_s21 + $0x70] sm:$0xff] }
  0x27   : > { %1158 = vmatprep.mubr.msk.f32.mxu0 %vm303_vm1, %v272_v28  ;;  %1182 = vmatprep.mubr.msk.f32.mxu1 %vm303_vm1, %v288_v29  ;;  %v279_v50 = vld [vmem:[%s1456_s26 + $0x68] sm:$0xff]  ;;  %v280_v52 = vld [vmem:[%s1456_s26 + $0x70] sm:$0xff]  ;;  %v645_v55 = vld [vmem:[%s1451_s21 + $0x80] sm:$0xff] }
  0x28   : > { %v295_v51 = vld [vmem:[%s1456_s26 + $0xe8] sm:$0xff]  ;;  %v296_v53 = vld [vmem:[%s1456_s26 + $0xf0] sm:$0xff]  ;;  %v281_v56 = vld [vmem:[%s1456_s26 + $0x78] sm:$0xff] }
  0x29   : > { %1159 = vmatmul.mubr.msk.f32.gmra.mrb[6].mxu0 %vm303_vm1, %v273_v32  ;;  %1183 = vmatmul.mubr.msk.f32.gmra.mrb[6].mxu1 %vm303_vm1, %v289_v33  ;;  %v646_v54 = vld [vmem:[%s1451_s21 + $0x88] sm:$0xff]  ;;  %v297_v57 = vld [vmem:[%s1456_s26 + $0xf8] sm:$0xff]  ;;  %v647_v59 = vld [vmem:[%s1451_s21 + $0x90] sm:$0xff]  ;;  %s1277_s26 = scalar_lea.vmem %s1276_s24, 8192 }
  0x2a   : > { %708 = vperm.xlu1 %1270, %v638_v30   ;;  %703 = vperm.xlu0 %1269, %v637_v31   ;;  %v648_v58 = vld [vmem:[%s1451_s21 + $0x98] sm:$0xff]  ;;  %v650_v60 = vld [vmem:[%s1451_s21 + $0xa8] sm:$0xff]  ;;  %v649_v61 = vld [vmem:[%s1451_s21 + $0xa0] sm:$0xff] }
  0x2b   : > { %1161 = vmatprep.mubr.msk.f32.mxu0 %vm303_vm1, %v274_v34  ;;  %1185 = vmatprep.mubr.msk.f32.mxu1 %vm303_vm1, %v290_v35  ;;  %v652_v62 = vld [vmem:[%s1451_s21 + $0xb8] sm:$0xff]  ;;  %v651_v63 = vld [vmem:[%s1451_s21 + $0xb0] sm:$0xff]  ;;  %v654_v0 = vld [vmem:[%s1451_s21 + $0xc8] sm:$0xff] }
  0x2c   : > { %v653_v1 = vld [vmem:[%s1451_s21 + $0xc0] sm:$0xff]  ;;  %v656_v2 = vld [vmem:[%s1451_s21 + $0xd8] sm:$0xff]  ;;  %v655_v3 = vld [vmem:[%s1451_s21 + $0xd0] sm:$0xff] }
  0x2d   : > { %1162 = vmatmul.mubr.msk.f32.gmra.mrb[8].mxu0 %vm303_vm1, %v275_v38  ;;  %1186 = vmatmul.mubr.msk.f32.gmra.mrb[8].mxu1 %vm303_vm1, %v291_v39  ;;  %v658_v4 = vld [vmem:[%s1451_s21 + $0xe8] sm:$0xff]  ;;  %v657_v5 = vld [vmem:[%s1451_s21 + $0xe0] sm:$0xff]  ;;  %v660_v6 = vld [vmem:[%s1451_s21 + $0xf8] sm:$0xff] }
  0x2e   : > { %718 = vperm.xlu1 %1270, %v640_v36   ;;  %713 = vperm.xlu0 %1269, %v639_v37   ;;  %v659_v7 = vld [vmem:[%s1451_s21 + $0xf0] sm:$0xff]  ;;  %v1591_v33 = vld [vmem:[%s1734_s3] ss:$0 sm:$0xff]  ;;  %s1271_s21 = scalar_lea.vmem %s1675_s11, 4096 }
  0x2f   : > { %1164 = vmatprep.mubr.msk.f32.mxu0 %vm303_vm1, %v276_v40  ;;  %1188 = vmatprep.mubr.msk.f32.mxu1 %vm303_vm1, %v292_v41  ;;  %p1272_p12 = scmp.ne.s32.totalorder %s1675_s11, %s1271_s21  ;;  %p1279_p2 = scmp.lt.s32.totalorder %s1277_s26, %s1271_s21 }
  0x31   : > { %1165 = vmatmul.mubr.msk.f32.gmra.mrb[10].mxu0 %vm303_vm1, %v277_v44  ;;  %1189 = vmatmul.mubr.msk.f32.gmra.mrb[10].mxu1 %vm303_vm1, %v293_v45  ;;  %p1273_p13 = pnand %p1272_p12, %p1420_p4  ;;  %p1280_p3 = por %p1279_p2, %p1278_p1 }
  0x32   : > { %728 = vperm.xlu1 %1270, %v642_v42   ;;  %723 = vperm.xlu0 %1269, %v641_v43  }
  0x33   : > { %1167 = vmatprep.mubr.msk.f32.mxu0 %vm303_vm1, %v278_v46  ;;  %1191 = vmatprep.mubr.msk.f32.mxu1 %vm303_vm1, %v294_v47  ;;  %p1274_p0 = pneg %p1273_p13 }
  0x35   : > { %1168 = vmatmul.mubr.msk.f32.gmra.mrb[12].mxu0 %vm303_vm1, %v279_v50  ;;  %1192 = vmatmul.mubr.msk.f32.gmra.mrb[12].mxu1 %vm303_vm1, %v295_v51  ;;  %p1281_p5 = pnand %p1280_p3, %p1274_p0 }
  0x36   : > { %738 = vperm.xlu1 %1270, %v644_v48   ;;  %733 = vperm.xlu0 %1269, %v643_v49  }
  0x37   : > { %1170 = vmatprep.mubr.msk.f32.mxu0 %vm303_vm1, %v280_v52  ;;  %1194 = vmatprep.mubr.msk.f32.mxu1 %vm303_vm1, %v296_v53 }
  0x39   : > { %1171 = vmatmul.mubr.msk.f32.gmra.mrb[14].mxu0 %vm303_vm1, %v281_v56  ;;  %1195 = vmatmul.mubr.msk.f32.gmra.mrb[14].mxu1 %vm303_vm1, %v297_v57 }
  0x3a   : > { %748 = vperm.xlu1 %1270, %v646_v54   ;;  %743 = vperm.xlu0 %1269, %v645_v55  }
  0x3e   : > { %758 = vperm.xlu1 %1270, %v648_v58   ;;  %753 = vperm.xlu0 %1269, %v647_v59  }
  0x42   : > { %768 = vperm.xlu1 %1270, %v650_v60   ;;  %763 = vperm.xlu0 %1269, %v649_v61  }
  0x46   : > { %778 = vperm.xlu1 %1270, %v652_v62   ;;  %773 = vperm.xlu0 %1269, %v651_v63  }
  0x4a   : > { %788 = vperm.xlu1 %1270, %v654_v0   ;;  %783 = vperm.xlu0 %1269, %v653_v1  }
  0x4e   : > { %798 = vperm.xlu1 %1270, %v656_v2   ;;  %793 = vperm.xlu0 %1269, %v655_v3  }
  0x52   : > { %808 = vperm.xlu1 %1270, %v658_v4   ;;  %803 = vperm.xlu0 %1269, %v657_v5  }
  0x56   : > { %818 = vperm.xlu1 %1270, %v660_v6   ;;  %813 = vperm.xlu0 %1269, %v659_v7  }
  0x99   : > { %v674_v8 = vpop.permute.xlu1 %673  ;;  %v664_v9 = vpop.permute.xlu0 %663 }
  0x9d   : > { %v679_v10 = vpop.permute.xlu1 %678  ;;  %v669_v11 = vpop.permute.xlu0 %668 }
  0xa1   : > { %v689_v12 = vpop.permute.xlu1 %688  ;;  %v1561_v13 = vpop.permute.xlu0 %683 }
  0xa5   : > { %v1563_v14 = vpop.permute.xlu1 %698  ;;  %v1565_v15 = vpop.permute.xlu0 %693 }
  0xa9   : > { %v1567_v16 = vpop.permute.xlu1 %708  ;;  %v1569_v17 = vpop.permute.xlu0 %703 }
  0xad   : > { %v1571_v18 = vpop.permute.xlu1 %718  ;;  %v1573_v19 = vpop.permute.xlu0 %713 }
  0xb1   : > { %v1575_v20 = vpop.permute.xlu1 %728  ;;  %v1577_v21 = vpop.permute.xlu0 %723 }
  0xb5   : > { %v1579_v22 = vpop.permute.xlu1 %738  ;;  %v1581_v23 = vpop.permute.xlu0 %733 }
  0xb9   : > { %v749_v24 = vpop.permute.xlu1 %748  ;;  %v744_v25 = vpop.permute.xlu0 %743 }
  0xbd   : > { %v759_v26 = vpop.permute.xlu1 %758  ;;  %v754_v27 = vpop.permute.xlu0 %753 }
  0xc1   : > { %v769_v28 = vpop.permute.xlu1 %768  ;;  %v764_v29 = vpop.permute.xlu0 %763 }
  0xc5   : > { %v779_v30 = vpop.permute.xlu1 %778  ;;  %v1584_v31 = vpop.permute.xlu0 %773 }
  0xc9   : > { %v789_v41 = vpop.permute.xlu1 %788  ;;  %v1593_v42 = vpop.permute.xlu0 %783 }
  0xcd   : > { %v799_v3 = vpop.permute.xlu1 %798  ;;  %v794_v4 = vpop.permute.xlu0 %793 }
  0xf0   : > { %v1151_v32 = vpop.f32.mrb[0].mxu0  ;;  %v1175_v34 = vpop.f32.mrb[0].mxu1 }
  0xf1   : > { %v822_v35 = vmul.f32 %v1151_v32, %v669_v11  ;;  %v838_v36 = vmul.f32 %v1175_v34, %v749_v24  ;;  %v470_v37 = vpop.f32.mrb[1].mxu0  ;;  %v550_v38 = vpop.f32.mrb[1].mxu1 }
  0xf2   : > { %v821_v39 = vmul.f32 %v664_v9, %v470_v37  ;;  %v837_v40 = vmul.f32 %v744_v25, %v550_v38  ;;  %v809_v38 = vpop.permute.xlu1 %808 }
  0xf3   : > { %v861_v43 = vadd.f32 %v1591_v33, %v822_v35  ;;  %v877_v44 = vadd.f32 %v1591_v33, %v838_v36 }
  0xf4   : > { %v860_v45 = vadd.f32 %v1591_v33, %v821_v39  ;;  %v876_v46 = vadd.f32 %v1591_v33, %v837_v40  ;;  %v1154_v47 = vpop.f32.mrb[2].mxu0  ;;  %v1178_v48 = vpop.f32.mrb[2].mxu1 }
  0xf5   : > { %893 = vst [vmem:[%s1599_s9 + $0x8] sm:$0xff] %v861_v43  ;;  %909 = vst [vmem:[%s1599_s9 + $0x88] sm:$0xff] %v877_v44  ;;  %v824_v49 = vmul.f32 %v1154_v47, %v679_v10  ;;  %v840_v50 = vmul.f32 %v1178_v48, %v759_v26  ;;  %v480_v51 = vpop.f32.mrb[3].mxu0  ;;  %v560_v52 = vpop.f32.mrb[3].mxu1 }
  0xf6   : > { %892 = vst [vmem:[%s1599_s9] sm:$0xff] %v860_v45  ;;  %908 = vst [vmem:[%s1599_s9 + $0x80] sm:$0xff] %v876_v46  ;;  %v823_v53 = vmul.f32 %v674_v8, %v480_v51  ;;  %v839_v54 = vmul.f32 %v754_v27, %v560_v52  ;;  %v804_v39 = vpop.permute.xlu0 %803 }
  0xf7   : > { %v863_v55 = vadd.f32 %v1591_v33, %v824_v49  ;;  %v879_v56 = vadd.f32 %v1591_v33, %v840_v50 }
  0xf8   : > { %v862_v57 = vadd.f32 %v1591_v33, %v823_v53  ;;  %v878_v58 = vadd.f32 %v1591_v33, %v839_v54  ;;  %v1157_v59 = vpop.f32.mrb[4].mxu0  ;;  %v1181_v60 = vpop.f32.mrb[4].mxu1 }
  0xf9   : > { %895 = vst [vmem:[%s1599_s9 + $0x18] sm:$0xff] %v863_v55  ;;  %911 = vst [vmem:[%s1599_s9 + $0x98] sm:$0xff] %v879_v56  ;;  %v826_v61 = vmul.f32 %v1157_v59, %v689_v12  ;;  %v842_v62 = vmul.f32 %v1181_v60, %v769_v28  ;;  %v490_v63 = vpop.f32.mrb[5].mxu0  ;;  %v570_v0 = vpop.f32.mrb[5].mxu1 }
  0xfa   : > { %894 = vst [vmem:[%s1599_s9 + $0x10] sm:$0xff] %v862_v57  ;;  %910 = vst [vmem:[%s1599_s9 + $0x90] sm:$0xff] %v878_v58  ;;  %v825_v1 = vmul.f32 %v1561_v13, %v490_v63  ;;  %v841_v2 = vmul.f32 %v764_v29, %v570_v0  ;;  %v819_v60 = vpop.permute.xlu1 %818 }
  0xfb   : > { %v865_v5 = vadd.f32 %v1591_v33, %v826_v61  ;;  %v881_v6 = vadd.f32 %v1591_v33, %v842_v62  ;;  %v814_v61 = vpop.permute.xlu0 %813 }
  0xfc   : > { %v864_v7 = vadd.f32 %v1591_v33, %v825_v1  ;;  %v880_v8 = vadd.f32 %v1591_v33, %v841_v2  ;;  %v1160_v9 = vpop.f32.mrb[6].mxu0  ;;  %v1184_v10 = vpop.f32.mrb[6].mxu1 }
  0xfd   : > { %897 = vst [vmem:[%s1599_s9 + $0x28] sm:$0xff] %v865_v5  ;;  %913 = vst [vmem:[%s1599_s9 + $0xa8] sm:$0xff] %v881_v6  ;;  %v828_v11 = vmul.f32 %v1160_v9, %v1563_v14  ;;  %v844_v12 = vmul.f32 %v1184_v10, %v779_v30  ;;  %v500_v13 = vpop.f32.mrb[7].mxu0  ;;  %v580_v24 = vpop.f32.mrb[7].mxu1 }
  0xfe   : > { %896 = vst [vmem:[%s1599_s9 + $0x20] sm:$0xff] %v864_v7  ;;  %912 = vst [vmem:[%s1599_s9 + $0xa0] sm:$0xff] %v880_v8  ;;  %v827_v25 = vmul.f32 %v1565_v15, %v500_v13  ;;  %v843_v26 = vmul.f32 %v1584_v31, %v580_v24 }
  0xff   : > { %v867_v27 = vadd.f32 %v1591_v33, %v828_v11  ;;  %v883_v28 = vadd.f32 %v1591_v33, %v844_v12 }
 0x100   : > { %v866_v29 = vadd.f32 %v1591_v33, %v827_v25  ;;  %v882_v32 = vadd.f32 %v1591_v33, %v843_v26  ;;  %v1163_v14 = vpop.f32.mrb[8].mxu0  ;;  %v1187_v30 = vpop.f32.mrb[8].mxu1 }
 0x101   : > { %899 = vst [vmem:[%s1599_s9 + $0x38] sm:$0xff] %v867_v27  ;;  %915 = vst [vmem:[%s1599_s9 + $0xb8] sm:$0xff] %v883_v28  ;;  %v830_v34 = vmul.f32 %v1163_v14, %v1567_v16  ;;  %v846_v35 = vmul.f32 %v1187_v30, %v789_v41  ;;  %v510_v15 = vpop.f32.mrb[9].mxu0  ;;  %v590_v36 = vpop.f32.mrb[9].mxu1 }
 0x102   : > { %898 = vst [vmem:[%s1599_s9 + $0x30] sm:$0xff] %v866_v29  ;;  %914 = vst [vmem:[%s1599_s9 + $0xb0] sm:$0xff] %v882_v32  ;;  %v829_v31 = vmul.f32 %v1569_v17, %v510_v15  ;;  %v845_v37 = vmul.f32 %v1593_v42, %v590_v36 }
 0x103   : > { %v869_v40 = vadd.f32 %v1591_v33, %v830_v34  ;;  %v885_v43 = vadd.f32 %v1591_v33, %v846_v35 }
 0x104   : > { %v868_v16 = vadd.f32 %v1591_v33, %v829_v31  ;;  %v884_v41 = vadd.f32 %v1591_v33, %v845_v37  ;;  %v1166_v44 = vpop.f32.mrb[10].mxu0  ;;  %v1190_v45 = vpop.f32.mrb[10].mxu1 }
 0x105   : > { %901 = vst [vmem:[%s1599_s9 + $0x48] sm:$0xff] %v869_v40  ;;  %917 = vst [vmem:[%s1599_s9 + $0xc8] sm:$0xff] %v885_v43  ;;  %v832_v17 = vmul.f32 %v1166_v44, %v1571_v18  ;;  %v848_v42 = vmul.f32 %v1190_v45, %v799_v3  ;;  %v520_v46 = vpop.f32.mrb[11].mxu0  ;;  %v600_v47 = vpop.f32.mrb[11].mxu1 }
 0x106   : > { %900 = vst [vmem:[%s1599_s9 + $0x40] sm:$0xff] %v868_v16  ;;  %916 = vst [vmem:[%s1599_s9 + $0xc0] sm:$0xff] %v884_v41  ;;  %v831_v48 = vmul.f32 %v1573_v19, %v520_v46  ;;  %v847_v49 = vmul.f32 %v794_v4, %v600_v47 }
 0x107   : > { %v871_v50 = vadd.f32 %v1591_v33, %v832_v17  ;;  %v887_v51 = vadd.f32 %v1591_v33, %v848_v42 }
 0x108   : > { %v870_v52 = vadd.f32 %v1591_v33, %v831_v48  ;;  %v886_v53 = vadd.f32 %v1591_v33, %v847_v49  ;;  %v1169_v54 = vpop.f32.mrb[12].mxu0  ;;  %v1193_v18 = vpop.f32.mrb[12].mxu1 }
 0x109   : > { %903 = vst [vmem:[%s1599_s9 + $0x58] sm:$0xff] %v871_v50  ;;  %919 = vst [vmem:[%s1599_s9 + $0xd8] sm:$0xff] %v887_v51  ;;  %v834_v55 = vmul.f32 %v1169_v54, %v1575_v20  ;;  %v850_v56 = vmul.f32 %v1193_v18, %v809_v38  ;;  %v530_v57 = vpop.f32.mrb[13].mxu0  ;;  %v610_v19 = vpop.f32.mrb[13].mxu1 }
 0x10a   : > { %902 = vst [vmem:[%s1599_s9 + $0x50] sm:$0xff] %v870_v52  ;;  %918 = vst [vmem:[%s1599_s9 + $0xd0] sm:$0xff] %v886_v53  ;;  %v833_v58 = vmul.f32 %v1577_v21, %v530_v57  ;;  %v849_v59 = vmul.f32 %v804_v39, %v610_v19 }
 0x10b   : > { %v873_v62 = vadd.f32 %v1591_v33, %v834_v55  ;;  %v889_v20 = vadd.f32 %v1591_v33, %v850_v56 }
 0x10c   : > { %v872_v63 = vadd.f32 %v1591_v33, %v833_v58  ;;  %v888_v0 = vadd.f32 %v1591_v33, %v849_v59  ;;  %v1172_v1 = vpop.f32.mrb[14].mxu0  ;;  %v1196_v2 = vpop.f32.mrb[14].mxu1 }
 0x10d   : > { %905 = vst [vmem:[%s1599_s9 + $0x68] sm:$0xff] %v873_v62  ;;  %921 = vst [vmem:[%s1599_s9 + $0xe8] sm:$0xff] %v889_v20  ;;  %v836_v21 = vmul.f32 %v1172_v1, %v1579_v22  ;;  %v852_v3 = vmul.f32 %v1196_v2, %v819_v60  ;;  %v540_v4 = vpop.f32.mrb[15].mxu0  ;;  %v620_v5 = vpop.f32.mrb[15].mxu1 }
 0x10e   : > { %904 = vst [vmem:[%s1599_s9 + $0x60] sm:$0xff] %v872_v63  ;;  %920 = vst [vmem:[%s1599_s9 + $0xe0] sm:$0xff] %v888_v0  ;;  %v835_v6 = vmul.f32 %v1581_v23, %v540_v4  ;;  %v851_v7 = vmul.f32 %v814_v61, %v620_v5 }
 0x10f   : > { %v875_v8 = vadd.f32 %v1591_v33, %v836_v21  ;;  %v891_v9 = vadd.f32 %v1591_v33, %v852_v3 }
 0x110   : > { %v874_v22 = vadd.f32 %v1591_v33, %v835_v6  ;;  %v890_v10 = vadd.f32 %v1591_v33, %v851_v7 }
 0x111   : > { %907 = vst [vmem:[%s1599_s9 + $0x78] sm:$0xff] %v875_v8  ;;  %923 = vst [vmem:[%s1599_s9 + $0xf8] sm:$0xff] %v891_v9 }
 0x112   : > { %906 = vst [vmem:[%s1599_s9 + $0x70] sm:$0xff] %v874_v22  ;;  %922 = vst [vmem:[%s1599_s9 + $0xf0] sm:$0xff] %v890_v10 }
 0x113   : > { %1284 = shalt.err (!%p1281_p5)
}
 0x114   : > { %s1285_s29 = scalar_lea.hbm %s1673_s13, 4096  ;;  %s1289_s6 = scalar_lea.hbm %s1735_s4, 8192 }
 0x115   : > { %p1286_p6 = scmp.ne.s32.totalorder %s1673_s13, %s1285_s29  ;;  %p1290_p10 = scmp.lt.u32.totalorder %s1673_s13, %s1735_s4 }
 0x116   : > { %p1291_p11 = scmp.lt.u32.totalorder %s1289_s6, %s1285_s29  ;;  %p1293_p13 = scmp.lt.u32.totalorder %s1285_s29, %s1673_s13 }
 0x117   : > { %p1287_p7 = pnand %p1286_p6, %p1420_p4 }
 0x118   : > { %p1292_p12 = por %p1291_p11, %p1290_p10 }
 0x119   : > { %p1288_p9 = pneg %p1287_p7 }
 0x11a   : > { %p1294_p0 = por %p1293_p13, %p1292_p12 }
 0x11c   : > { %p1295_p1 = pnand %p1294_p0, %p1288_p9 }
 0x11e   : > { %1298 = shalt.err (!%p1295_p1)
}
 0x11f   : > { %s1353_s9 = smov 128   ;;  %s1354_s10 = smov 8  }
 0x120   : > { %1211 = dma.vmem_to_hbm [thread:$0]  (%p1420_p4), %s1675_s11, 4096, %s1673_s13, %s1685_s14, %s1353_s9, %s1353_s9, %s1354_s10  }
 0x121 PF: > { %p1217_p2 = scmp.ge.s32.totalorder %s1349_s20, 2  ;;  %s954_s18 = sand.u32 1, %s1329_s15  }
 0x122   : > { %s955_s12 = scalar_lea.sflag [#allocation3], %s954_s18 }
 0x123   : > { %p1214_p3 = pnand %p1217_p2, %p1427_p8 }
 0x125   : > { %1324 = dma.done.wait (!%p1214_p3), %s955_s12, 4096  }
 0x126   : > { %1326 = vsyncadd (!%p1214_p3), %s955_s12, 4294963200  ;;  %s17_s20 = sadd.s32 1, %s1349_s20   ;;  %s1738_s15 = smov %s1333_s16 }
 0x127   : > { %p14_p5 = scmp.ge.s32.totalorder %s17_s20, 4   ;;  %s1739_s16 = smov %s1337_s17 }
 0x128   : > { %s1740_s17 = smov %s1433_s28  ;;  %s1741_s18 = smov %s1345_s19 }
 0x129   : > { %s1742_s19 = smov %s1744_s23  ;;  %16 = sbr.rel (!%p14_p5) target bundleno = 4 (0x4), region = 80 }
 0x130   :  { %960 = vsyncpa [#allocation3], 1 }
 0x131   :  { %962 = vsyncpa [#allocation3 + $0x1], 1 }

</bundles_post_ra>
